<compile_context>
chip_gen: v5e
topology: v5e:2x2
jax: 0.10.0
libtpu: 0.0.40
codegen_flags: <defaults>
</compile_context>

<pallas_src>
import numpy as np

import jax
import jax.numpy as jnp
from jax.experimental import pallas as pl
from jax.experimental.pallas import tpu as pltpu


# Order in which the fused weight slabs are passed to the kernel.
_WKEYS = ("wxc", "bxc", "wn", "bn", "wh", "wch", "wgs", "wgn", "bg")


def _gru_kernel(x_ref, h_ref, wxc_ref, bxc_ref, wn_ref, bn_ref, wh_ref,
                wch_ref, wgs_ref, wgn_ref, bg_ref, out_ref):
    H = out_ref.shape[-1]
    E = wn_ref.shape[0]
    w_dtype = wxc_ref.dtype

    x = x_ref[...]                               # (TB, input_size), f32
    h = h_ref[...].astype(jnp.float32)           # (TB, H) -- gate math in f32

    x_in = x[:, :E].astype(w_dtype)              # (TB, E)
    x_nb = x[:, x.shape[1] - E:].astype(w_dtype)  # (TB, E)
    h_mm = h.astype(w_dtype)

    # GEMM 1: fused x-side of r | u | c | se  -> (TB, 4H), bias folded in.
    xproj = (jnp.dot(x_in, wxc_ref[...], preferred_element_type=jnp.float32)
             + bxc_ref[...].astype(jnp.float32))

    # GEMM 2: neighbor embedding ne = relu(layer2(x_nb)) -> (TB, H).
    ne = jnp.maximum(
        jnp.dot(x_nb, wn_ref[...], preferred_element_type=jnp.float32)
        + bn_ref[...].astype(jnp.float32), 0.0)

    # GEMM 3: h-side of r and u fused -> (TB, 2H).
    hproj = jnp.dot(h_mm, wh_ref[...], preferred_element_type=jnp.float32)

    r = jax.nn.sigmoid(xproj[:, 0:H] + hproj[:, 0:H])
    u = jax.nn.sigmoid(xproj[:, H:2 * H] + hproj[:, H:2 * H])

    # GEMM 4: candidate h-side (depends on r).
    c = jnp.tanh(
        xproj[:, 2 * H:3 * H]
        + jnp.dot((r * h).astype(w_dtype), wch_ref[...],
                  preferred_element_type=jnp.float32))

    se = jnp.maximum(xproj[:, 3 * H:4 * H], 0.0)

    # GEMMs 5+6: new_gate([se, ne]) with the weight pre-split -> no concat.
    g = jax.nn.sigmoid(
        jnp.dot(se.astype(w_dtype), wgs_ref[...],
                preferred_element_type=jnp.float32)
        + jnp.dot(ne.astype(w_dtype), wgn_ref[...],
                  preferred_element_type=jnp.float32)
        + bg_ref[...].astype(jnp.float32))

    # new_h = u*h + (1-u)*c*g  ==  u*(h - cg) + cg   (one fewer VPU multiply)
    cg = c * g
    out_ref[...] = (u * (h - cg) + cg).astype(out_ref.dtype)


def fuse_params(params, input_size, hidden_size, dtype=jnp.bfloat16):
    """One-time weight preprocessing (hoisted out of the per-step path).

    No structural zeros are stored.  Produces:
      wxc: (E, 4H)  [Wrx | Wux | Wcx | W_layer1]      (weight dtype)
      bxc: (1, 4H)  [br | bu | bc | b1]               (f32)
      wn : (E, H)   W_layer2,  bn: (1, H) b2
      wh : (H, 2H)  [Wrh | Wuh]
      wch: (H, H)   candidate h-side
      wgs: (H, H)   new_gate rows multiplying se
      wgn: (H, H)   new_gate rows multiplying ne
      bg : (1, H)
    Weights are cast to `dtype` (default bf16, full-rate MXU path); biases f32.
    """
    E = input_size // 2
    H = hidden_size

    def t(w):  # PyTorch Linear (out, in) -> (in, out)
        return jnp.asarray(w).T

    wr = jnp.asarray(params["reset_w"])
    wu = jnp.asarray(params["update_w"])
    wc = jnp.asarray(params["cand_w"])
    wr_x, wr_h = t(wr[:, :E]), t(wr[:, E:])
    wu_x, wu_h = t(wu[:, :E]), t(wu[:, E:])
    wc_x, wc_h = t(wc[:, :E]), t(wc[:, E:])
    w1 = t(params["layer1_w"])     # (E, H)
    w2 = t(params["layer2_w"])     # (E, H)
    wg = t(params["newgate_w"])    # (2H, H), rows [0:H]=se side, [H:2H]=ne side

    bxc = jnp.concatenate(
        [jnp.asarray(params["reset_b"]), jnp.asarray(params["update_b"]),
         jnp.asarray(params["cand_b"]), jnp.asarray(params["layer1_b"])]
    ).reshape(1, 4 * H).astype(jnp.float32)

    return {
        "wxc": jnp.concatenate([wr_x, wu_x, wc_x, w1], axis=1).astype(dtype),
        "bxc": bxc,
        "wn": w2.astype(dtype),
        "bn": jnp.asarray(params["layer2_b"]).reshape(1, H).astype(jnp.float32),
        "wh": jnp.concatenate([wr_h, wu_h], axis=1).astype(dtype),
        "wch": wc_h.astype(dtype),
        "wgs": wg[:H].astype(dtype),
        "wgn": wg[H:].astype(dtype),
        "bg": jnp.asarray(params["newgate_b"]).reshape(1, H).astype(jnp.float32),
    }


def _round_up(a, m):
    return (a + m - 1) // m * m


def _padded_bytes(shape, dtype):
    """VMEM bytes of one buffer of `shape`, including (8, 128) tile padding."""
    shape = tuple(shape)
    if len(shape) == 1:
        shape = (1,) + shape
    lead = 1
    for d in shape[:-2]:
        lead *= int(d)
    rows = _round_up(int(shape[-2]), 8)
    cols = _round_up(int(shape[-1]), 128)
    return lead * rows * cols * np.dtype(dtype).itemsize


def modified_gru_cell(inputs, state, fused, *, batch_tile=256):
    """inputs: (B, input_size) f32, state: (B, H) f32, fused: fuse_params(...).

    Returns (new_h, new_h) like the PyTorch module.
    Note on tiling: keep batch_tile >= 256 on v6e/v7x (2x256x256 MXU); 128 is
    already efficient on v5e.  For lane-aligned gate slabs prefer H that is a
    multiple of 128 when the model allows.
    """
    B, input_size = inputs.shape
    H = state.shape[1]

    TB = _round_up(min(batch_tile, _round_up(B, 8)), 8)  # multiple of 8 sublanes
    Bp = _round_up(B, TB)
    if Bp != B:
        # For an RNN scan, hoist this padding outside the time loop and carry
        # the padded state instead of re-padding every step.
        inputs_p = jnp.pad(inputs, ((0, Bp - B), (0, 0)))
        state_p = jnp.pad(state, ((0, Bp - B), (0, 0)))
    else:
        inputs_p, state_p = inputs, state

    grid = (Bp // TB,)

    # VMEM budget: double-buffered activation tiles + (still double-buffered,
    # but DMA'd once) weight slabs + live f32 intermediates, +25% headroom,
    # clamped under v7x's 64 MiB physical VMEM.
    act = (_padded_bytes((TB, input_size), inputs.dtype)
           + 2 * _padded_bytes((TB, H), state.dtype))
    wts = sum(_padded_bytes(fused[k].shape, fused[k].dtype) for k in _WKEYS)
    live = _padded_bytes((TB, 8 * H), jnp.float32)
    vmem_limit = int(1.25 * (2 * act + 2 * wts + live))
    vmem_limit = min(max(vmem_limit, 16 * 2**20), 64 * 2**20)

    def batch_spec(cols):
        return pl.BlockSpec((TB, cols), lambda i: (i, 0))

    def const_spec(shape):
        return pl.BlockSpec(shape, lambda i: (0, 0))

    new_h = pl.pallas_call(
        _gru_kernel,
        out_shape=jax.ShapeDtypeStruct((Bp, H), state.dtype),
        grid=grid,
        in_specs=[batch_spec(input_size), batch_spec(H)]
        + [const_spec(fused[k].shape) for k in _WKEYS],
        out_specs=batch_spec(H),
        compiler_params=pltpu.CompilerParams(
            dimension_semantics=("parallel",),
            vmem_limit_bytes=vmem_limit),
    )(inputs_p, state_p, *[fused[k] for k in _WKEYS])

    if Bp != B:
        new_h = new_h[:B]
    return new_h, new_h


def init_params(key, input_size, hidden_size):
    E = input_size // 2
    H = hidden_size

    def linear(key, out_f, in_f):
        kw, kb = jax.random.split(key)
        bound = 1.0 / jnp.sqrt(in_f)
        w = jax.random.uniform(kw, (out_f, in_f), jnp.float32, -bound, bound)
        b = jax.random.uniform(kb, (out_f,), jnp.float32, -bound, bound)
        return w, b

    keys = jax.random.split(key, 6)
    p = {}
    p["reset_w"], p["reset_b"] = linear(keys[0], H, E + H)
    p["update_w"], p["update_b"] = linear(keys[1], H, E + H)
    p["cand_w"], p["cand_b"] = linear(keys[2], H, E + H)
    p["layer1_w"], p["layer1_b"] = linear(keys[3], H, E)
    p["layer2_w"], p["layer2_b"] = linear(keys[4], H, E)
    p["newgate_w"], p["newgate_b"] = linear(keys[5], H, 2 * H)
    # tmp1, tmp2, new_r_gate exist in __init__ but are unused in forward.
    return p


def reference_forward(inputs, state, params):
    E = inputs.shape[1] // 2
    x_in = inputs[:, :E]
    x_nb = inputs[:, inputs.shape[1] - E:]
    gate_in = jnp.concatenate([x_in, state], axis=1)
    r = jax.nn.sigmoid(gate_in @ params["reset_w"].T + params["reset_b"])
    u = jax.nn.sigmoid(gate_in @ params["update_w"].T + params["update_b"])
    cand_in = jnp.concatenate([x_in, r * state], axis=1)
    c = jnp.tanh(cand_in @ params["cand_w"].T + params["cand_b"])
    se = jax.nn.relu(x_in @ params["layer1_w"].T + params["layer1_b"])
    ne = jax.nn.relu(x_nb @ params["layer2_w"].T + params["layer2_b"])
    g = jax.nn.sigmoid(jnp.concatenate([se, ne], axis=1) @ params["newgate_w"].T
                       + params["newgate_b"])
    new_h = u * state + (1.0 - u) * c * g
    return new_h


if __name__ == "__main__":
    B, input_size, hidden_size = 16, 32, 32

    key = jax.random.PRNGKey(0)
    k_x, k_h, k_p = jax.random.split(key, 3)
    inputs = jax.random.normal(k_x, (B, input_size), jnp.float32)
    state = jax.random.normal(k_h, (B, hidden_size), jnp.float32)
    params = init_params(k_p, input_size, hidden_size)

    ref = reference_forward(inputs, state, params)

    # 1) f32-weight path: tight numerical check against the pure-JAX reference.
    fused_f32 = fuse_params(params, input_size, hidden_size, dtype=jnp.float32)
    out_f32, _ = jax.jit(modified_gru_cell)(inputs, state, fused_f32)
    out_f32 = jax.block_until_ready(out_f32)
    assert jnp.allclose(out_f32, ref, atol=1e-4, rtol=1e-4), (
        "f32 kernel mismatch vs reference; max |diff| = "
        f"{float(jnp.max(jnp.abs(out_f32 - ref)))}")

    # 2) bf16-weight path (default, recommended fast path): loose tolerance
    #    because weights (and MXU operands) are bf16; accumulation stays f32.
    fused_bf16 = fuse_params(params, input_size, hidden_size)
    out_bf16, _ = jax.jit(modified_gru_cell)(inputs, state, fused_bf16)
    out_bf16 = jax.block_until_ready(out_bf16)
    assert jnp.allclose(out_bf16, ref, atol=3e-2, rtol=3e-2), (
        "bf16 kernel mismatch vs reference; max |diff| = "
        f"{float(jnp.max(jnp.abs(out_bf16 - ref)))}")

    print("KERNEL_OK")
</pallas_src>

<mosaic_0001>
module attributes {stable_mosaic.version = 11 : i64} {
  func.func @_gru_kernel(%arg0: i32, %arg1: memref<16x32xf32, #tpu.memory_space<vmem>>, %arg2: memref<16x32xf32, #tpu.memory_space<vmem>>, %arg3: memref<16x128xf32, #tpu.memory_space<vmem>>, %arg4: memref<1x128xf32, #tpu.memory_space<vmem>>, %arg5: memref<16x32xf32, #tpu.memory_space<vmem>>, %arg6: memref<1x32xf32, #tpu.memory_space<vmem>>, %arg7: memref<32x64xf32, #tpu.memory_space<vmem>>, %arg8: memref<32x32xf32, #tpu.memory_space<vmem>>, %arg9: memref<32x32xf32, #tpu.memory_space<vmem>>, %arg10: memref<32x32xf32, #tpu.memory_space<vmem>>, %arg11: memref<1x32xf32, #tpu.memory_space<vmem>>, %arg12: memref<16x32xf32, #tpu.memory_space<vmem>>) attributes {dimension_semantics = [#tpu.dimension_semantics<parallel>], iteration_bounds = array<i64: 1>, scalar_prefetch = 0 : i64, scratch_operands = 0 : i64, tpu.core_type = #tpu.core_type<tc>, window_params = [{transform_indices = @transform_0, window_bounds = array<i64: 16, 32>}, {transform_indices = @transform_1, window_bounds = array<i64: 16, 32>}, {pipeline_mode = #tpu.pipeline_mode<synchronous>, transform_indices = @transform_2, window_bounds = array<i64: 16, 128>}, {pipeline_mode = #tpu.pipeline_mode<synchronous>, transform_indices = @transform_3, window_bounds = array<i64: 1, 128>}, {pipeline_mode = #tpu.pipeline_mode<synchronous>, transform_indices = @transform_4, window_bounds = array<i64: 16, 32>}, {pipeline_mode = #tpu.pipeline_mode<synchronous>, transform_indices = @transform_5, window_bounds = array<i64: 1, 32>}, {pipeline_mode = #tpu.pipeline_mode<synchronous>, transform_indices = @transform_6, window_bounds = array<i64: 32, 64>}, {pipeline_mode = #tpu.pipeline_mode<synchronous>, transform_indices = @transform_7, window_bounds = array<i64: 32, 32>}, {pipeline_mode = #tpu.pipeline_mode<synchronous>, transform_indices = @transform_8, window_bounds = array<i64: 32, 32>}, {pipeline_mode = #tpu.pipeline_mode<synchronous>, transform_indices = @transform_9, window_bounds = array<i64: 32, 32>}, {pipeline_mode = #tpu.pipeline_mode<synchronous>, transform_indices = @transform_10, window_bounds = array<i64: 1, 32>}, {transform_indices = @transform_11, window_bounds = array<i64: 16, 32>}]} {
    %c0 = arith.constant 0 : index
    %c0_0 = arith.constant 0 : index
    %0 = vector.load %arg1[%c0, %c0_0] : memref<16x32xf32, #tpu.memory_space<vmem>>, vector<16x32xf32>
    %c0_1 = arith.constant 0 : index
    %c0_2 = arith.constant 0 : index
    %1 = vector.load %arg2[%c0_1, %c0_2] : memref<16x32xf32, #tpu.memory_space<vmem>>, vector<16x32xf32>
    %2 = vector.extract_strided_slice %0 {offsets = [0, 0], sizes = [16, 16], strides = [1, 1]} : vector<16x32xf32> to vector<16x16xf32>
    %3 = vector.extract_strided_slice %0 {offsets = [0, 16], sizes = [16, 16], strides = [1, 1]} : vector<16x32xf32> to vector<16x16xf32>
    %c0_3 = arith.constant 0 : index
    %c0_4 = arith.constant 0 : index
    %4 = vector.load %arg3[%c0_3, %c0_4] : memref<16x128xf32, #tpu.memory_space<vmem>>, vector<16x128xf32>
    %cst = arith.constant dense<0.000000e+00> : vector<16x128xf32>
    %5 = tpu.matmul %2, %4, %cst {dimension_numbers = #tpu.dot_dimension_numbers<[1], [0], [0], [1], [0, 0, 1, 1], [], []>} : vector<16x16xf32>, vector<16x128xf32>, vector<16x128xf32> -> vector<16x128xf32>
    %c0_5 = arith.constant 0 : index
    %c0_6 = arith.constant 0 : index
    %6 = vector.load %arg4[%c0_5, %c0_6] : memref<1x128xf32, #tpu.memory_space<vmem>>, vector<1x128xf32>
    %7 = vector.broadcast %6 : vector<1x128xf32> to vector<16x128xf32>
    %8 = arith.addf %5, %7 : vector<16x128xf32>
    %c0_7 = arith.constant 0 : index
    %c0_8 = arith.constant 0 : index
    %9 = vector.load %arg5[%c0_7, %c0_8] : memref<16x32xf32, #tpu.memory_space<vmem>>, vector<16x32xf32>
    %cst_9 = arith.constant dense<0.000000e+00> : vector<16x32xf32>
    %10 = tpu.matmul %3, %9, %cst_9 {dimension_numbers = #tpu.dot_dimension_numbers<[1], [0], [0], [1], [0, 0, 1, 1], [], []>} : vector<16x16xf32>, vector<16x32xf32>, vector<16x32xf32> -> vector<16x32xf32>
    %c0_10 = arith.constant 0 : index
    %c0_11 = arith.constant 0 : index
    %11 = vector.load %arg6[%c0_10, %c0_11] : memref<1x32xf32, #tpu.memory_space<vmem>>, vector<1x32xf32>
    %12 = vector.broadcast %11 : vector<1x32xf32> to vector<16x32xf32>
    %13 = arith.addf %10, %12 : vector<16x32xf32>
    %cst_12 = arith.constant 0.000000e+00 : f32
    %14 = vector.broadcast %cst_12 : f32 to vector<16x32xf32>
    %15 = arith.maximumf %13, %14 : vector<16x32xf32>
    %c0_13 = arith.constant 0 : index
    %c0_14 = arith.constant 0 : index
    %16 = vector.load %arg7[%c0_13, %c0_14] : memref<32x64xf32, #tpu.memory_space<vmem>>, vector<32x64xf32>
    %cst_15 = arith.constant dense<0.000000e+00> : vector<16x64xf32>
    %17 = tpu.matmul %1, %16, %cst_15 {dimension_numbers = #tpu.dot_dimension_numbers<[1], [0], [0], [1], [0, 0, 1, 1], [], []>} : vector<16x32xf32>, vector<32x64xf32>, vector<16x64xf32> -> vector<16x64xf32>
    %18 = vector.extract_strided_slice %8 {offsets = [0, 0], sizes = [16, 32], strides = [1, 1]} : vector<16x128xf32> to vector<16x32xf32>
    %19 = vector.extract_strided_slice %17 {offsets = [0, 0], sizes = [16, 32], strides = [1, 1]} : vector<16x64xf32> to vector<16x32xf32>
    %20 = arith.addf %18, %19 : vector<16x32xf32>
    %21 = arith.negf %20 : vector<16x32xf32>
    %22 = math.exp %21 : vector<16x32xf32>
    %cst_16 = arith.constant 1.000000e+00 : f32
    %23 = vector.broadcast %cst_16 : f32 to vector<16x32xf32>
    %24 = arith.addf %23, %22 : vector<16x32xf32>
    %25 = arith.divf %23, %24 : vector<16x32xf32>
    %26 = vector.extract_strided_slice %8 {offsets = [0, 32], sizes = [16, 32], strides = [1, 1]} : vector<16x128xf32> to vector<16x32xf32>
    %27 = vector.extract_strided_slice %17 {offsets = [0, 32], sizes = [16, 32], strides = [1, 1]} : vector<16x64xf32> to vector<16x32xf32>
    %28 = arith.addf %26, %27 : vector<16x32xf32>
    %29 = arith.negf %28 : vector<16x32xf32>
    %30 = math.exp %29 : vector<16x32xf32>
    %cst_17 = arith.constant 1.000000e+00 : f32
    %31 = vector.broadcast %cst_17 : f32 to vector<16x32xf32>
    %32 = arith.addf %31, %30 : vector<16x32xf32>
    %33 = arith.divf %31, %32 : vector<16x32xf32>
    %34 = vector.extract_strided_slice %8 {offsets = [0, 64], sizes = [16, 32], strides = [1, 1]} : vector<16x128xf32> to vector<16x32xf32>
    %35 = arith.mulf %25, %1 : vector<16x32xf32>
    %c0_18 = arith.constant 0 : index
    %c0_19 = arith.constant 0 : index
    %36 = vector.load %arg8[%c0_18, %c0_19] : memref<32x32xf32, #tpu.memory_space<vmem>>, vector<32x32xf32>
    %cst_20 = arith.constant dense<0.000000e+00> : vector<16x32xf32>
    %37 = tpu.matmul %35, %36, %cst_20 {dimension_numbers = #tpu.dot_dimension_numbers<[1], [0], [0], [1], [0, 0, 1, 1], [], []>} : vector<16x32xf32>, vector<32x32xf32>, vector<16x32xf32> -> vector<16x32xf32>
    %38 = arith.addf %34, %37 : vector<16x32xf32>
    %39 = math.tanh %38 : vector<16x32xf32>
    %40 = vector.extract_strided_slice %8 {offsets = [0, 96], sizes = [16, 32], strides = [1, 1]} : vector<16x128xf32> to vector<16x32xf32>
    %cst_21 = arith.constant 0.000000e+00 : f32
    %41 = vector.broadcast %cst_21 : f32 to vector<16x32xf32>
    %42 = arith.maximumf %40, %41 : vector<16x32xf32>
    %c0_22 = arith.constant 0 : index
    %c0_23 = arith.constant 0 : index
    %43 = vector.load %arg9[%c0_22, %c0_23] : memref<32x32xf32, #tpu.memory_space<vmem>>, vector<32x32xf32>
    %cst_24 = arith.constant dense<0.000000e+00> : vector<16x32xf32>
    %44 = tpu.matmul %42, %43, %cst_24 {dimension_numbers = #tpu.dot_dimension_numbers<[1], [0], [0], [1], [0, 0, 1, 1], [], []>} : vector<16x32xf32>, vector<32x32xf32>, vector<16x32xf32> -> vector<16x32xf32>
    %c0_25 = arith.constant 0 : index
    %c0_26 = arith.constant 0 : index
    %45 = vector.load %arg10[%c0_25, %c0_26] : memref<32x32xf32, #tpu.memory_space<vmem>>, vector<32x32xf32>
    %cst_27 = arith.constant dense<0.000000e+00> : vector<16x32xf32>
    %46 = tpu.matmul %15, %45, %cst_27 {dimension_numbers = #tpu.dot_dimension_numbers<[1], [0], [0], [1], [0, 0, 1, 1], [], []>} : vector<16x32xf32>, vector<32x32xf32>, vector<16x32xf32> -> vector<16x32xf32>
    %47 = arith.addf %44, %46 : vector<16x32xf32>
    %c0_28 = arith.constant 0 : index
    %c0_29 = arith.constant 0 : index
    %48 = vector.load %arg11[%c0_28, %c0_29] : memref<1x32xf32, #tpu.memory_space<vmem>>, vector<1x32xf32>
    %49 = vector.broadcast %48 : vector<1x32xf32> to vector<16x32xf32>
    %50 = arith.addf %47, %49 : vector<16x32xf32>
    %51 = arith.negf %50 : vector<16x32xf32>
    %52 = math.exp %51 : vector<16x32xf32>
    %cst_30 = arith.constant 1.000000e+00 : f32
    %53 = vector.broadcast %cst_30 : f32 to vector<16x32xf32>
    %54 = arith.addf %53, %52 : vector<16x32xf32>
    %55 = arith.divf %53, %54 : vector<16x32xf32>
    %56 = arith.mulf %39, %55 : vector<16x32xf32>
    %57 = arith.subf %1, %56 : vector<16x32xf32>
    %58 = arith.mulf %33, %57 : vector<16x32xf32>
    %59 = arith.addf %58, %56 : vector<16x32xf32>
    %c0_31 = arith.constant 0 : index
    %c0_32 = arith.constant 0 : index
    %60 = vector.load %arg12[%c0_31, %c0_32] : memref<16x32xf32, #tpu.memory_space<vmem>>, vector<16x32xf32>
    tpu.vector_store %arg12[%c0_31, %c0_32], %59 {strides = array<i32>} : memref<16x32xf32, #tpu.memory_space<vmem>>, vector<16x32xf32>,
    return
  }
  func.func @transform_0(%arg0: i32) -> (i32, i32) {
    %c0_i32 = arith.constant 0 : i32
    %c0_i32_0 = arith.constant 0 : i32
    return %arg0, %c0_i32 : i32, i32
  }
  func.func @transform_1(%arg0: i32) -> (i32, i32) {
    %c0_i32 = arith.constant 0 : i32
    %c0_i32_0 = arith.constant 0 : i32
    return %arg0, %c0_i32 : i32, i32
  }
  func.func @transform_2(%arg0: i32) -> (i32, i32) {
    %c0_i32 = arith.constant 0 : i32
    %c0_i32_0 = arith.constant 0 : i32
    %c0_i32_1 = arith.constant 0 : i32
    return %c0_i32, %c0_i32_0 : i32, i32
  }
  func.func @transform_3(%arg0: i32) -> (i32, i32) {
    %c0_i32 = arith.constant 0 : i32
    %c0_i32_0 = arith.constant 0 : i32
    %c0_i32_1 = arith.constant 0 : i32
    return %c0_i32, %c0_i32_0 : i32, i32
  }
  func.func @transform_4(%arg0: i32) -> (i32, i32) {
    %c0_i32 = arith.constant 0 : i32
    %c0_i32_0 = arith.constant 0 : i32
    %c0_i32_1 = arith.constant 0 : i32
    return %c0_i32, %c0_i32_0 : i32, i32
  }
  func.func @transform_5(%arg0: i32) -> (i32, i32) {
    %c0_i32 = arith.constant 0 : i32
    %c0_i32_0 = arith.constant 0 : i32
    %c0_i32_1 = arith.constant 0 : i32
    return %c0_i32, %c0_i32_0 : i32, i32
  }
  func.func @transform_6(%arg0: i32) -> (i32, i32) {
    %c0_i32 = arith.constant 0 : i32
    %c0_i32_0 = arith.constant 0 : i32
    %c0_i32_1 = arith.constant 0 : i32
    return %c0_i32, %c0_i32_0 : i32, i32
  }
  func.func @transform_7(%arg0: i32) -> (i32, i32) {
    %c0_i32 = arith.constant 0 : i32
    %c0_i32_0 = arith.constant 0 : i32
    %c0_i32_1 = arith.constant 0 : i32
    return %c0_i32, %c0_i32_0 : i32, i32
  }
  func.func @transform_8(%arg0: i32) -> (i32, i32) {
    %c0_i32 = arith.constant 0 : i32
    %c0_i32_0 = arith.constant 0 : i32
    %c0_i32_1 = arith.constant 0 : i32
    return %c0_i32, %c0_i32_0 : i32, i32
  }
  func.func @transform_9(%arg0: i32) -> (i32, i32) {
    %c0_i32 = arith.constant 0 : i32
    %c0_i32_0 = arith.constant 0 : i32
    %c0_i32_1 = arith.constant 0 : i32
    return %c0_i32, %c0_i32_0 : i32, i32
  }
  func.func @transform_10(%arg0: i32) -> (i32, i32) {
    %c0_i32 = arith.constant 0 : i32
    %c0_i32_0 = arith.constant 0 : i32
    %c0_i32_1 = arith.constant 0 : i32
    return %c0_i32, %c0_i32_0 : i32, i32
  }
  func.func @transform_11(%arg0: i32) -> (i32, i32) {
    %c0_i32 = arith.constant 0 : i32
    %c0_i32_0 = arith.constant 0 : i32
    return %arg0, %c0_i32 : i32, i32
  }
}

</mosaic_0001>

<bundles_post_ra>
// kernel: modified_gru_cell.1
= control target key start
LH: loop header
LB: loop body
LE: loop exit
PB: predicated region body
PF: predicated region fallthrough
CT: control target
= control target key end

     0   :  { %16 = vsyncpa [#allocation3], 0  ;;  %s1023_s0 = inlined_call_operand.hbm [shape: f32[16,32], index: 0, kind: input, shape index: {}]   ;;  %s1024_s1 = inlined_call_operand.hbm [shape: f32[16,32], index: 1, kind: input, shape index: {}]   ;;  %s1025_s2 = inlined_call_operand.hbm [shape: f32[16,128], index: 2, kind: input, shape index: {}]   ;;  %s1026_s3 = inlined_call_operand.vmem [shape: f32[1,128], index: 3, kind: input, shape index: {}]   ;;  %s1027_s4 = inlined_call_operand.hbm [shape: f32[16,32], index: 4, kind: input, shape index: {}]   ;;  %s1028_s5 = inlined_call_operand.vmem [shape: f32[1,32], index: 5, kind: input, shape index: {}]   ;;  %s1029_s6 = inlined_call_operand.hbm [shape: f32[32,64], index: 6, kind: input, shape index: {}]   ;;  %s1030_s7 = inlined_call_operand.hbm [shape: f32[32,32], index: 7, kind: input, shape index: {}]   ;;  %s1031_s8 = inlined_call_operand.hbm [shape: f32[32,32], index: 8, kind: input, shape index: {}]   ;;  %s1032_s9 = inlined_call_operand.hbm [shape: f32[32,32], index: 9, kind: input, shape index: {}]   ;;  %s1033_s10 = inlined_call_operand.hbm [shape: f32[1,32], index: 10, kind: input, shape index: {}]   ;;  %s1034_s11 = inlined_call_operand.vmem [shape: f32[16,32], index: 11, kind: output, shape index: {}]  }
   0x1   :  { %17 = vsyncpa [#allocation5], 0 }
   0x2   :  { %18 = vsyncpa [#allocation8], 0 }
   0x3   :  { %19 = vsyncpa [#allocation11], 0 }
   0x4   :  { %20 = vsyncpa [#allocation14], 0  ;;  %s38_s19 = sshll.u32 %s1024_s1, 4  ;;  %s833_s20 = smov [#allocation4]   ;;  %s39_s19 = int_to_ptr.hbm [resolvable:$true] %s38_s19 }
   0x5   :  { %s40_s21 = sshll.u32 %s833_s20, 4  ;;  %s66_s24 = sshll.u32 %s1027_s4, 4  ;;  %s41_s21 = int_to_ptr.vmem [resolvable:$true] %s40_s21  ;;  %s67_s24 = int_to_ptr.hbm [resolvable:$true] %s66_s24 }
   0x6   :  { %s834_s25 = smov 128   ;;  %s835_s26 = smov 8  }
   0x7   :  { %46 = dma.hbm_to_vmem [thread:$0]  %s39_s19, 256, %s41_s21, [#allocation5], %s834_s25, %s834_s25, %s835_s26  }
   0x8   :  { %s836_s27 = smov [#allocation7]   ;;  %s94_s1 = sshll.u32 %s1030_s7, 4  ;;  %s95_s1 = int_to_ptr.hbm [resolvable:$true] %s94_s1 }
   0x9   :  { %s68_s28 = sshll.u32 %s836_s27, 4  ;;  %s120_s13 = sshll.u32 %s1032_s9, 4  ;;  %s69_s28 = int_to_ptr.vmem [resolvable:$true] %s68_s28  ;;  %s121_s13 = int_to_ptr.hbm [resolvable:$true] %s120_s13 }
   0xa   :  { %74 = dma.hbm_to_vmem [thread:$0]  %s67_s24, 256, %s69_s28, [#allocation8], %s834_s25, %s834_s25, %s835_s26  }
   0xb   :  { %s837_s14 = smov [#allocation10]   ;;  %s838_s16 = smov [#allocation13]  }
   0xc   :  { %s96_s15 = sshll.u32 %s837_s14, 4  ;;  %s122_s7 = sshll.u32 %s838_s16, 4  ;;  %s97_s15 = int_to_ptr.vmem [resolvable:$true] %s96_s15  ;;  %s123_s7 = int_to_ptr.vmem [resolvable:$true] %s122_s7 }
   0xd   :  { %102 = dma.hbm_to_vmem [thread:$0]  %s95_s1, 512, %s97_s15, [#allocation11], %s834_s25, %s834_s25, %s835_s26  }
   0xe   :  { %s25_s19 = sshll.u32 %s1023_s0, 4  ;;  %s51_s21 = sshll.u32 %s1025_s2, 4  ;;  %s26_s19 = int_to_ptr.hbm [resolvable:$true] %s25_s19  ;;  %s52_s21 = int_to_ptr.hbm [resolvable:$true] %s51_s21 }
   0xf   :  { %128 = dma.hbm_to_vmem [thread:$0]  %s121_s13, 512, %s123_s7, [#allocation14], %s834_s25, %s834_s25, %s835_s26  }
  0x10   :  { %s839_s22 = smov [#allocation2]   ;;  %s840_s24 = smov [#allocation6]  }
  0x11   :  { %s27_s23 = sshll.u32 %s839_s22, 4  ;;  %s53_s0 = sshll.u32 %s840_s24, 4  ;;  %s28_s23 = int_to_ptr.vmem [resolvable:$true] %s27_s23  ;;  %s54_s0 = int_to_ptr.vmem [resolvable:$true] %s53_s0 }
  0x12   :  { %33 = dma.hbm_to_vmem [thread:$0]  %s26_s19, 256, %s28_s23, [#allocation3], %s834_s25, %s834_s25, %s835_s26  }
  0x13   :  { %s81_s29 = sshll.u32 %s1029_s6, 4  ;;  %s107_s1 = sshll.u32 %s1031_s8, 4  ;;  %s82_s29 = int_to_ptr.hbm [resolvable:$true] %s81_s29  ;;  %s108_s1 = int_to_ptr.hbm [resolvable:$true] %s107_s1 }
  0x14   :  { %59 = dma.hbm_to_vmem [thread:$0]  %s52_s21, 256, %s54_s0, [#allocation5], %s834_s25, %s834_s25, %s835_s26  }
  0x15   :  { %s841_s4 = smov [#allocation9]   ;;  %s842_s13 = smov [#allocation12]  }
  0x16   :  { %s83_s12 = sshll.u32 %s841_s4, 4  ;;  %s109_s6 = sshll.u32 %s842_s13, 4  ;;  %s84_s12 = int_to_ptr.vmem [resolvable:$true] %s83_s12  ;;  %s110_s6 = int_to_ptr.vmem [resolvable:$true] %s109_s6 }
  0x17   :  { %89 = dma.hbm_to_vmem [thread:$0]  %s82_s29, 512, %s84_s12, [#allocation8], %s834_s25, %s834_s25, %s835_s26  }
  0x18   :  { %s134_s16 = sshll.u32 %s1033_s10, 4  ;;  %s843_s8 = smov [#allocation15]   ;;  %s135_s16 = int_to_ptr.hbm [resolvable:$true] %s134_s16 }
  0x19   :  { %115 = dma.hbm_to_vmem [thread:$0]  %s108_s1, 512, %s110_s6, [#allocation11], %s834_s25, %s834_s25, %s835_s26  }
  0x1a   :  { %s136_s7 = sshll.u32 %s843_s8, 4  ;;  %s137_s7 = int_to_ptr.vmem [resolvable:$true] %s136_s7 }
  0x1b   :  { %139 = dma.hbm_to_vmem [thread:$0]  %s135_s16, 16, %s137_s7, [#allocation14]  }
  0x1c   :  { %823 = dma.done.wait [#allocation3], 256  }
  0x1d   :  { %824 = vsyncadd [#allocation3], 4294967040 }
  0x1e   :  { %825 = dma.done.wait [#allocation5], 512  }
  0x1f   :  { %826 = vsyncadd [#allocation5], 4294966784 }
  0x20   :  { %827 = dma.done.wait [#allocation8], 768  }
  0x21   :  { %828 = vsyncadd [#allocation8], 4294966528 }
  0x22   :  { %829 = dma.done.wait [#allocation11], 1024  }
  0x23   :  { %830 = vsyncadd [#allocation11], 4294966272 }
  0x24   :  { %831 = dma.done.wait [#allocation14], 528  }
  0x25   :  { %832 = vsyncadd [#allocation14], 4294966768  ;;  %v181_v0 = vld [vmem:[#allocation6 + $0x8] sm:$0xff]  ;;  %v176_v1 = vld [vmem:[#allocation2] sm:$0xff]  ;;  %vm186_vm0 = vcmask 130048   ;;  %s844_s10 = smov 112  }
  0x26   :  { %v180_v2 = vld [vmem:[#allocation6] sm:$0xff]  ;;  %207 = vmatpush.msra.mxu0 %v181_v0  ;;  %565 = vmatpush.msra.mxu2 %v181_v0  ;;  %v177_v3 = vld [vmem:[#allocation2 + $0x8] sm:$0xff]  ;;  %v258_v4 = vld [vmem:[#allocation9 + $0x18] sm:$0xff]  ;;  %vm259_vm1 = vcmask 261120   ;;  %s845_s17 = smov 32   ;;  %s846_s19 = smov 64  }
  0x27   :  { %222 = vrot.lane.b32.xlu0 %v176_v1, %s844_s10  ;;  %v257_v5 = vld [vmem:[#allocation9 + $0x10] sm:$0xff]  ;;  %v217_v6 = vld [vmem:[#allocation7 + $0x8] sm:$0xff]  ;;  %v256_v8 = vld [vmem:[#allocation9 + $0x8] sm:$0xff] }
  0x28   :  { %208 = vmatpush.msra.mxu0 %v180_v2  ;;  %566 = vmatpush.msra.mxu2 %v180_v2  ;;  %v216_v7 = vld [vmem:[#allocation7] sm:$0xff]  ;;  %v255_v9 = vld [vmem:[#allocation9] sm:$0xff]  ;;  %v965_v11 = vld [vmem:[#allocation4 + $0x8] sm:$0xff] }
  0x29   :  { %549 = vmatmul.msk.f32.vlgmr.msra.gmra.mxu0 %vm186_vm0, %v176_v1  ;;  %550 = vmatmul.msk.f32.vlgmr.msra.gmra.mxu2 %vm186_vm0, %v177_v3  ;;  %v961_v10 = vld [vmem:[#allocation4] sm:$0xff]  ;;  %v584_v14 = vld [vmem:[%s1026_s3] ss:$0 sm:$0xff]  ;;  %v334_v20 = vld [vmem:[#allocation10 + $0x18] sm:$0xff] }
  0x2a   :  { %278 = vmatpush.msrb.mxu2 %v258_v4  ;;  %244 = vmatpush.msra.mxu1 %v217_v6  ;;  %v333_v22 = vld [vmem:[#allocation10 + $0x10] sm:$0xff]  ;;  %v332_v23 = vld [vmem:[#allocation10 + $0x8] sm:$0xff]  ;;  %v331_v24 = vld [vmem:[#allocation10] sm:$0xff] }
  0x2b   :  { %567 = vmatpush.msra.mxu3 %v217_v6  ;;  %v385_v30 = vld [vmem:[#allocation13 + $0x18] sm:$0xff]  ;;  %v384_v58 = vld [vmem:[#allocation13 + $0x10] sm:$0xff]  ;;  %v383_v60 = vld [vmem:[#allocation13 + $0x8] sm:$0xff] }
  0x2c   :  { %279 = vmatpush.msrb.mxu2 %v257_v5  ;;  %245 = vmatpush.msra.mxu1 %v216_v7  ;;  %v381_v59 = vld [vmem:[#allocation12 + $0x18] sm:$0xff]  ;;  %v380_v61 = vld [vmem:[#allocation12 + $0x10] sm:$0xff]  ;;  %v382_v62 = vld [vmem:[#allocation13] sm:$0xff] }
  0x2d   :  { %568 = vmatpush.msra.mxu3 %v216_v7  ;;  %404 = vmatpush.msrb.mxu0 %v385_v30  ;;  %v379_v63 = vld [vmem:[#allocation12 + $0x8] sm:$0xff]  ;;  %v378_v0 = vld [vmem:[#allocation12] sm:$0xff] }
  0x2e   :  { %280 = vmatpush.msrb.mxu2 %v256_v8  ;;  %437 = vmatpush.msrb.mxu1 %v381_v59  ;;  %v585_v1 = vld [vmem:[%s1028_s5] ss:$0 sm:$0xff]  ;;  %s847_s5 = smov 96  }
  0x2f   :  { %224 = vrot.lane.b32.xlu0 %v177_v3, %s844_s10  ;;  %353 = vmatpush.msrb.mxu3 %v334_v20 }
  0x30   :  { %281 = vmatpush.msrb.mxu2 %v255_v9  ;;  %405 = vmatpush.msrb.mxu0 %v384_v58 }
  0x31   :  { %553 = vmatmul.msk.f32.vlgmr.msrb.gmra.mxu2 %vm259_vm1, %v961_v10  ;;  %354 = vmatpush.msrb.mxu3 %v333_v22 }
  0x32   :  { %406 = vmatpush.msrb.mxu0 %v383_v60  ;;  %438 = vmatpush.msrb.mxu1 %v380_v61 }
  0x33   :  { %355 = vmatpush.msrb.mxu3 %v332_v23 }
  0x34   :  { %407 = vmatpush.msrb.mxu0 %v382_v62  ;;  %439 = vmatpush.msrb.mxu1 %v379_v63 }
  0x35   :  { %356 = vmatpush.msrb.mxu3 %v331_v24 }
  0x36   :  { %440 = vmatpush.msrb.mxu1 %v378_v0 }
  0x39   :  { %554 = vmatmul.msk.f32.gmra.mxu2 %vm259_vm1, %v965_v11 }
  0x99   :  { %v223_v12 = vpop.permute.xlu0 %222 }
  0x9a   :  { %551 = vmatmul.msk.f32.vlgmr.msra.gmra.mxu1 %vm186_vm0, %v223_v12 }
  0xa1   :  { %v225_v13 = vpop.permute.xlu0 %224 }
  0xa2   :  { %552 = vmatmul.msk.f32.vlgmr.msra.gmra.mxu3 %vm186_vm0, %v225_v13 }
  0xa6   :  { %v210_v15 = vpop.f32.mrf.mxu0 }
  0xa7   :  { %v974_v16 = vadd.f32 %v584_v14, %v210_v15 }
  0xa9   :  { %v376_v17 = vmax.f32 %v974_v16, 0.0 }
  0xab   :  { %417 = vrot.lane.b32.xlu1 %v376_v17, %s845_s17 }
  0xac   :  { %v213_v18 = vpop.f32.mrf.mxu2 }
  0xad   :  { %v978_v19 = vadd.f32 %v584_v14, %v213_v18  ;;  %v586_v14 = vld [vmem:[#allocation15] ss:$0 sm:$0xff] }
  0xaf   :  { %v377_v21 = vmax.f32 %v978_v19, 0.0 }
  0xb3   :  { %419 = vrot.lane.b32.xlu1 %v377_v21, %s845_s17 }
  0xb4   :  { %v283_v25 = vpop.f32.mrf.mxu2 }
  0xb5   :  { %v289_v26 = vadd.f32 %v283_v25, %v974_v16 }
  0xb7   :  { %v555_v27 = vmul.f32 -1.442695, %v289_v26 }
  0xb9   :  { %587 = vpow2.f32 %v555_v27 }
  0xbc   :  { %v286_v28 = vpop.f32.mrf.mxu2 }
  0xbd   :  { %v290_v29 = vadd.f32 %v286_v28, %v978_v19 }
  0xbf   :  { %v588_v31 = vpop.eup %587  ;;  %v556_v32 = vmul.f32 -1.442695, %v290_v29 }
  0xc0   :  { %v297_v33 = vadd.f32 1.0, %v588_v31 }
  0xc1   :  { %589 = vpow2.f32 %v556_v32 }
  0xc2   :  { %591 = vrcp.f32 %v297_v33  ;;  %v310_v39 = vand.u32 2147483648, %v297_v33  ;;  %v308_v41 = vand.u32 2147483647, %v297_v33  ;;  %vm304_vm3 = vweird.f32 %v297_v33 }
  0xc4   :  { %v311_v44 = vor.u32 1.1754944e-38, %v310_v39  ;;  %vm309_vm5 = vcmp.eq.f32.partialorder %v308_v41, 8.507059e+37 }
  0xc7   :  { %v590_v34 = vpop.eup %589 }
  0xc8   :  { %v592_v35 = vpop.eup %591  ;;  %v298_v36 = vadd.f32 1.0, %v590_v34 }
  0xc9   :  { %v300_v37 = vmul.f32 %v592_v35, %v297_v33  ;;  %vm305_vm2 = vweird.f32 %v592_v35 }
  0xca   :  { %593 = vrcp.f32 %v298_v36  ;;  %vm306_vm4 = vmor %vm304_vm3, %vm305_vm2  ;;  %v325_v50 = vand.u32 2147483648, %v298_v36  ;;  %v323_v52 = vand.u32 2147483647, %v298_v36  ;;  %vm319_vm7 = vweird.f32 %v298_v36 }
  0xcb   :  { %v301_v38 = vsub.f32 1.0, %v300_v37 }
  0xcc   :  { %v326_v54 = vor.u32 1.1754944e-38, %v325_v50  ;;  %vm324_vm9 = vcmp.eq.f32.partialorder %v323_v52, 8.507059e+37 }
  0xcd   :  { %v302_v40 = vmul.f32 %v592_v35, %v301_v38 }
  0xcf   :  { %v303_v42 = vadd.f32 %v592_v35, %v302_v40 }
  0xd0   :  { %v594_v43 = vpop.eup %593 }
  0xd1   :  { %v315_v45 = vmul.f32 %v594_v43, %v298_v36  ;;  %v307_v46 = vsel %vm306_vm4, %v592_v35, %v303_v42  ;;  %vm320_vm6 = vweird.f32 %v594_v43 }
  0xd2   :  { %v984_v47 = vsel %vm309_vm5, %v311_v44, %v307_v46  ;;  %vm321_vm8 = vmor %vm319_vm7, %vm320_vm6 }
  0xd3   :  { %v329_v48 = vmul.f32 %v984_v47, %v961_v10  ;;  %v316_v49 = vsub.f32 1.0, %v315_v45 }
  0xd5   :  { %557 = vmatmul.msk.f32.vlgmr.msrb.gmra.mxu3 %vm259_vm1, %v329_v48  ;;  %v317_v51 = vmul.f32 %v594_v43, %v316_v49 }
  0xd7   :  { %v318_v53 = vadd.f32 %v594_v43, %v317_v51 }
  0xd9   :  { %v322_v55 = vsel %vm321_vm8, %v594_v43, %v318_v53 }
  0xda   :  { %v989_v56 = vsel %vm324_vm9, %v326_v54, %v322_v55 }
  0xdb   :  { %v330_v57 = vmul.f32 %v989_v56, %v965_v11 }
  0xdd   :  { %558 = vmatmul.msk.f32.gmra.mxu3 %vm259_vm1, %v330_v57 }
 0x117   :  { %v247_v2 = vpop.f32.mrf.mxu1 }
 0x118   :  { %v248_v3 = vadd.f32 %v585_v1, %v247_v2 }
 0x11a   :  { %v253_v4 = vmax.f32 %v248_v3, 0.0 }
 0x11c   :  { %559 = vmatmul.msk.f32.vlgmr.msrb.gmra.mxu0 %vm259_vm1, %v253_v4 }
 0x11d   :  { %v418_v5 = vpop.permute.xlu1 %417 }
 0x11e   :  { %561 = vmatmul.msk.f32.vlgmr.msrb.gmra.mxu1 %vm259_vm1, %v418_v5 }
 0x125   :  { %v250_v6 = vpop.f32.mrf.mxu3  ;;  %v420_v7 = vpop.permute.xlu1 %419 }
 0x126   :  { %v251_v8 = vadd.f32 %v585_v1, %v250_v6  ;;  %562 = vmatmul.msk.f32.gmra.mxu1 %vm259_vm1, %v420_v7 }
 0x128   :  { %v254_v9 = vmax.f32 %v251_v8, 0.0 }
 0x12a   :  { %560 = vmatmul.msk.f32.gmra.mxu0 %vm259_vm1, %v254_v9 }
 0x158   :  { %v358_v12 = vpop.f32.mrf.mxu3 }
 0x159   :  { %366 = vrot.lane.b32.xlu2 %v358_v12, %s846_s19 }
 0x160   :  { %v361_v13 = vpop.f32.mrf.mxu3 }
 0x161   :  { %368 = vrot.lane.b32.xlu2 %v361_v13, %s846_s19 }
 0x199   :  { %v409_v15 = vpop.f32.mrf.mxu0 }
 0x19b   :  { %v442_v17 = vpop.f32.mrf.mxu1 }
 0x19c   :  { %v443_v18 = vadd.f32 %v442_v17, %v409_v15 }
 0x19e   :  { %v452_v20 = vadd.f32 %v586_v14, %v443_v18 }
 0x1a0   :  { %v563_v21 = vmul.f32 -1.442695, %v452_v20 }
 0x1a2   :  { %595 = vpow2.f32 %v563_v21 }
 0x1a3   :  { %v445_v22 = vpop.f32.mrf.mxu1 }
 0x1a7   :  { %v412_v23 = vpop.f32.mrf.mxu0 }
 0x1a8   :  { %v596_v24 = vpop.eup %595  ;;  %v446_v25 = vadd.f32 %v445_v22, %v412_v23 }
 0x1a9   :  { %v460_v26 = vadd.f32 1.0, %v596_v24 }
 0x1aa   :  { %v453_v27 = vadd.f32 %v586_v14, %v446_v25 }
 0x1ab   :  { %597 = vrcp.f32 %v460_v26  ;;  %v473_v34 = vand.u32 2147483648, %v460_v26  ;;  %v471_v36 = vand.u32 2147483647, %v460_v26  ;;  %vm467_vm11 = vweird.f32 %v460_v26 }
 0x1ac   :  { %v564_v28 = vmul.f32 -1.442695, %v453_v27 }
 0x1ad   :  { %v474_v38 = vor.u32 1.1754944e-38, %v473_v34  ;;  %vm472_vm13 = vcmp.eq.f32.partialorder %v471_v36, 8.507059e+37 }
 0x1ae   :  { %599 = vpow2.f32 %v564_v28 }
 0x1b1   :  { %v598_v29 = vpop.eup %597 }
 0x1b2   :  { %v463_v30 = vmul.f32 %v598_v29, %v460_v26  ;;  %vm468_vm10 = vweird.f32 %v598_v29 }
 0x1b3   :  { %vm469_vm12 = vmor %vm467_vm11, %vm468_vm10  ;;  %v367_v52 = vpop.permute.xlu2 %366 }
 0x1b4   :  { %v600_v31 = vpop.eup %599  ;;  %v464_v32 = vsub.f32 1.0, %v463_v30  ;;  %v372_v53 = vadd.f32 %v367_v52, %v974_v16 }
 0x1b5   :  { %v461_v33 = vadd.f32 1.0, %v600_v31 }
 0x1b6   :  { %v465_v35 = vmul.f32 %v598_v29, %v464_v32 }
 0x1b7   :  { %601 = vrcp.f32 %v461_v33  ;;  %v488_v44 = vand.u32 2147483648, %v461_v33  ;;  %v486_v46 = vand.u32 2147483647, %v461_v33  ;;  %vm482_vm15 = vweird.f32 %v461_v33 }
 0x1b8   :  { %v466_v37 = vadd.f32 %v598_v29, %v465_v35  ;;  %603 = vtanh.f32 %v372_v53 }
 0x1b9   :  { %v489_v49 = vor.u32 1.1754944e-38, %v488_v44  ;;  %vm487_vm2 = vcmp.eq.f32.partialorder %v486_v46, 8.507059e+37 }
 0x1ba   :  { %v470_v39 = vsel %vm469_vm12, %v598_v29, %v466_v37 }
 0x1bb   :  { %v475_v40 = vsel %vm472_vm13, %v474_v38, %v470_v39  ;;  %v369_v54 = vpop.permute.xlu2 %368 }
 0x1bc   :  { %494 = vrot.lane.b32.xlu0 %v475_v40, %s846_s19  ;;  %v373_v59 = vadd.f32 %v369_v54, %v978_v19 }
 0x1bd   :  { %v602_v41 = vpop.eup %601 }
 0x1be   :  { %v478_v42 = vmul.f32 %v602_v41, %v461_v33  ;;  %vm483_vm14 = vweird.f32 %v602_v41  ;;  %v604_v55 = vpop.eup %603  ;;  %605 = vtanh.f32 %v373_v59 }
 0x1bf   :  { %vm484_vm0 = vmor %vm482_vm15, %vm483_vm14 }
 0x1c0   :  { %v479_v43 = vsub.f32 1.0, %v478_v42 }
 0x1c2   :  { %v480_v45 = vmul.f32 %v602_v41, %v479_v43 }
 0x1c4   :  { %v481_v48 = vadd.f32 %v602_v41, %v480_v45  ;;  %v606_v60 = vpop.eup %605 }
 0x1c6   :  { %v485_v50 = vsel %vm484_vm0, %v602_v41, %v481_v48 }
 0x1c7   :  { %v490_v51 = vsel %vm487_vm2, %v489_v49, %v485_v50 }
 0x1c8   :  { %496 = vrot.lane.b32.xlu1 %v490_v51, %s846_s19 }
 0x22e   :  { %v495_v57 = vpop.permute.xlu0 %494 }
 0x22f   :  { %v500_v58 = vmul.f32 %v604_v55, %v495_v57 }
 0x231   :  { %504 = vrot.lane.b32.xlu2 %v500_v58, %s846_s19 }
 0x23a   :  { %v497_v61 = vpop.permute.xlu1 %496 }
 0x23b   :  { %v501_v62 = vmul.f32 %v606_v60, %v497_v61 }
 0x23d   :  { %506 = vrot.lane.b32.xlu0 %v501_v62, %s846_s19 }
 0x245   :  { %522 = vrot.lane.b32.xlu0 %v500_v58, %s847_s5 }
 0x28b   :  { %v505_v63 = vpop.permute.xlu2 %504 }
 0x28c   :  { %v510_v16 = vsub.f32 %v961_v10, %v505_v63 }
 0x28e   :  { %514 = vrot.lane.b32.xlu1 %v510_v16, %s845_s17 }
 0x296   :  { %524 = vrot.lane.b32.xlu1 %v501_v62, %s847_s5 }
 0x2af   :  { %v507_v0 = vpop.permute.xlu0 %506 }
 0x2b0   :  { %v511_v1 = vsub.f32 %v965_v11, %v507_v0 }
 0x2b2   :  { %516 = vrot.lane.b32.xlu2 %v511_v1, %s845_s17 }
 0x2b7   :  { %v523_v3 = vpop.permute.xlu0 %522 }
 0x300   :  { %v515_v19 = vpop.permute.xlu1 %514 }
 0x301   :  { %v520_v2 = vmul.f32 %v515_v19, %v984_v47 }
 0x303   :  { %v528_v4 = vadd.f32 %v523_v3, %v520_v2 }
 0x305   :  { %532 = vrot.lane.b32.xlu2 %v528_v4, %s847_s5 }
 0x308   :  { %v525_v7 = vpop.permute.xlu1 %524 }
 0x30c   :  { %v517_v5 = vpop.permute.xlu2 %516 }
 0x30d   :  { %v521_v6 = vmul.f32 %v517_v5, %v989_v56 }
 0x30f   :  { %v529_v8 = vadd.f32 %v525_v7, %v521_v6 }
 0x311   :  { %534 = vrot.lane.b32.xlu0 %v529_v8, %s847_s5 }
 0x35f   :  { %v533_v10 = vpop.permute.xlu2 %532 }
 0x360   :  { %538 = vst.msk [vmem:[%s1034_s11] sm:$0xff] %vm259_vm1, %v533_v10 }
 0x383   :  { %v535_v11 = vpop.permute.xlu0 %534 }
 0x384   :  { %539 = vst.msk [vmem:[%s1034_s11 + $0x8] sm:$0xff] %vm259_vm1, %v535_v11 }
 0x385   :  { %544 = vsyncpa [#allocation3], 1 }
 0x386   :  { %545 = vsyncpa [#allocation5], 1 }
 0x387   :  { %546 = vsyncpa [#allocation8], 1 }
 0x388   :  { %547 = vsyncpa [#allocation11], 1 }
 0x389   :  { %548 = vsyncpa [#allocation14], 1 }

</bundles_post_ra>
